<compile_context>
chip_gen: v7x
topology: tpu7x:2x2x1
jax: 0.10.0
libtpu: 0.0.40
codegen_flags: <defaults>
</compile_context>

<pallas_src>
import jax
import jax.numpy as jnp
from jax.experimental import pallas as pl
from jax.experimental.pallas import tpu as pltpu


def _round_up(a, b):
    return ((a + b - 1) // b) * b


def _pick_row_tile(rows, bytes_per_row, tm):
    """Row tile: multiple of 8, fits a ~16 MiB double-buffer budget, prefers a
    divisor of `rows` (no padding pass), and keeps the grid at >= ~8 steps."""
    budget = 16 * 1024 * 1024
    cap = min(tm, budget // max(1, 2 * bytes_per_row))
    cap = max(8, (cap // 8) * 8)
    target = max(8, _round_up(-(-rows // 8), 8))      # ~rows/8 -> >= 8 grid steps
    tr = max(8, (min(cap, target) // 8) * 8)
    if rows % tr != 0:                                # try a multiple-of-8 divisor
        d = tr
        while d > 8 and rows % d != 0:
            d -= 8
        if rows % d == 0:
            tr = d
    return tr


def _deconv_lrelu_kernel(x_ref, w_ref, b_ref, o_ref):
    # x_ref: (tr, W*Cin)        tr image rows, NHWC-flat
    # w_ref: (W*Cin, 4*W*Cout)  block-diagonal weight, columns ordered (di, j, dj, oc)
    # b_ref: (1, 4*W*Cout)      bias replicated into the same column order (f32)
    # o_ref: (tr, 4*W*Cout)     per input row: output rows 2i and 2i+1, NHWC-flat
    y = jnp.dot(x_ref[...], w_ref[...], preferred_element_type=jnp.float32)
    y = y + b_ref[...]
    y = jnp.maximum(y, 0.01 * y)            # LeakyReLU, PyTorch default slope 0.01
    o_ref[...] = y.astype(o_ref.dtype)      # single full-width, lane-dense store


def conv_transpose2d_lrelu_nhwc(x_nhwc, weight, bias, *, dtype=None, tm=4096):
    """NHWC fast path (no layout passes around the kernel).
    x_nhwc: (N, H, W, Cin); weight: (Cin, Cout, 2, 2) (PyTorch ConvTranspose2d layout);
    bias: (Cout,).  Returns (N, 2H, 2W, Cout)."""
    N, H, W, Cin = x_nhwc.shape
    Cout = weight.shape[1]
    width = 4 * W * Cout                                    # both output rows, flat NHWC
    kdt = jnp.dtype(dtype) if dtype is not None else jnp.dtype(jnp.float32)

    # Block-diagonal weight:
    #   bd[j*Cin+ic, di*(2*W*Cout) + j'*(2*Cout) + dj*Cout + oc] = (j==j') * weight[ic,oc,di,dj]
    w_r = jnp.transpose(weight, (0, 2, 3, 1)).astype(jnp.float32)   # (Cin, 2, 2, Cout)
    eye = jnp.eye(W, dtype=jnp.float32)
    bd = (eye[:, None, None, :, None, None] *
          w_r[None, :, :, None, :, :]).reshape(W * Cin, width).astype(kdt)
    b_packed = jnp.tile(bias.astype(jnp.float32), 4 * W).reshape(1, width)

    # Metadata-only reshape: one array row == one image row (NHWC is already row-major).
    rows = N * H
    x_rows = x_nhwc.reshape(rows, W * Cin).astype(kdt)

    bytes_per_row = W * Cin * kdt.itemsize + width * kdt.itemsize
    tr = _pick_row_tile(rows, bytes_per_row, tm)
    rows_p = _round_up(rows, tr)
    if rows_p != rows:
        # Ragged tail only (no multiple-of-8 divisor of `rows`): pad a few rows.
        x_rows = jnp.pad(x_rows, ((0, rows_p - rows), (0, 0)))

    vmem_est = 2 * tr * bytes_per_row + 2 * (bd.size * kdt.itemsize + width * 4)
    vmem_limit = int(min(max(vmem_est * 5 // 4, 32 << 20), 60 << 20))

    out = pl.pallas_call(
        _deconv_lrelu_kernel,
        out_shape=jax.ShapeDtypeStruct((rows_p, width), kdt),
        grid_spec=pltpu.PrefetchScalarGridSpec(
            num_scalar_prefetch=0,
            grid=(rows_p // tr,),
            in_specs=[
                pl.BlockSpec((tr, W * Cin), lambda i: (i, 0)),
                pl.BlockSpec((W * Cin, width), lambda i: (0, 0)),
                pl.BlockSpec((1, width), lambda i: (0, 0)),
            ],
            out_specs=pl.BlockSpec((tr, width), lambda i: (i, 0)),
        ),
        compiler_params=pltpu.CompilerParams(
            dimension_semantics=("parallel",),
            vmem_limit_bytes=vmem_limit),
        cost_estimate=pl.CostEstimate(
            flops=2 * rows_p * (W * Cin) * width,   # executed MXU work (block-diag incl.)
            transcendentals=0,
            bytes_accessed=(rows_p * W * Cin * kdt.itemsize
                            + rows_p * width * kdt.itemsize
                            + bd.size * kdt.itemsize + width * 4)),
    )(x_rows, bd, b_packed)

    if rows_p != rows:
        out = out[:rows]
    # Flat element order is (n, i, di, j, dj, oc) == NHWC of the 2x-upsampled image,
    # so this reshape is free (no HBM pass).
    return out.reshape(N, 2 * H, 2 * W, Cout)


def conv_transpose2d_lrelu(x_nchw, weight, bias, *, dtype=None, tm=4096):
    """NCHW interface matching the PyTorch module:
    nn.ConvTranspose2d(Cin, Cout, kernel=2, stride=2, pad=0) + LeakyReLU(0.01)."""
    x_nhwc = jnp.transpose(x_nchw, (0, 2, 3, 1))            # one input layout pass
    y = conv_transpose2d_lrelu_nhwc(x_nhwc, weight, bias, dtype=dtype, tm=tm)
    return jnp.transpose(y, (0, 3, 1, 2))                   # one channel-major pass


def _reference(x_nchw, weight, bias):
    """Plain-JAX reference of ConvTranspose2d(k=2, s=2, p=0) + LeakyReLU(0.01)."""
    N, Cin, H, W = x_nchw.shape
    Cout = weight.shape[1]
    y = jnp.einsum('ncij,codh->noidjh', x_nchw, weight)     # (N, Cout, H, 2, W, 2)
    y = y.reshape(N, Cout, 2 * H, 2 * W) + bias[None, :, None, None]
    return jnp.where(y > 0, y, 0.01 * y)


if __name__ == "__main__":
    key = jax.random.PRNGKey(0)
    k1, k2, k3 = jax.random.split(key, 3)

    N, Cin, H, W = 2, 4, 16, 16
    Cout = 8

    x = jax.random.normal(k1, (N, Cin, H, W), dtype=jnp.float32)
    # PyTorch ConvTranspose2d weight layout: (Cin, Cout, kH, kW) = (Cin, Cout, 2, 2)
    weight = 0.1 * jax.random.normal(k2, (Cin, Cout, 2, 2), dtype=jnp.float32)
    bias = 0.05 * jax.random.normal(k3, (Cout,), dtype=jnp.float32)

    ref = _reference(x, weight, bias)

    # NCHW path (exact PyTorch-module semantics, f32).
    out = jax.block_until_ready(conv_transpose2d_lrelu(x, weight, bias))
    assert out.shape == (N, Cout, 2 * H, 2 * W), out.shape
    err = float(jnp.max(jnp.abs(out - ref)))
    assert jnp.allclose(out, ref, atol=1e-4, rtol=1e-4), err

    # NHWC fast path (preferred interface: zero layout passes around the kernel).
    out_nhwc = jax.block_until_ready(
        conv_transpose2d_lrelu_nhwc(jnp.transpose(x, (0, 2, 3, 1)), weight, bias))
    assert jnp.allclose(jnp.transpose(out_nhwc, (0, 3, 1, 2)), ref, atol=1e-4, rtol=1e-4)

    # Optional bf16 boundary cast (v6e/v7x HBM-traffic option) -- looser tolerance.
    out_bf16 = jax.block_until_ready(
        conv_transpose2d_lrelu(x, weight, bias, dtype=jnp.bfloat16))
    assert jnp.allclose(out_bf16.astype(jnp.float32), ref, atol=5e-2, rtol=5e-2)

    print("KERNEL_OK")
</pallas_src>

<mosaic_0001>
module attributes {stable_mosaic.version = 11 : i64} {
  func.func @_deconv_lrelu_kernel(%arg0: i32, %arg1: memref<8x64xf32, #tpu.memory_space<vmem>>, %arg2: memref<64x512xf32, #tpu.memory_space<vmem>>, %arg3: memref<1x512xf32, #tpu.memory_space<vmem>>, %arg4: memref<8x512xf32, #tpu.memory_space<vmem>>) attributes {dimension_semantics = [#tpu.dimension_semantics<parallel>], iteration_bounds = array<i64: 4>, scalar_prefetch = 0 : i64, scratch_operands = 0 : i64, tpu.core_type = #tpu.core_type<tc>, window_params = [{transform_indices = @transform_0, window_bounds = array<i64: 8, 64>}, {pipeline_mode = #tpu.pipeline_mode<synchronous>, transform_indices = @transform_1, window_bounds = array<i64: 64, 512>}, {pipeline_mode = #tpu.pipeline_mode<synchronous>, transform_indices = @transform_2, window_bounds = array<i64: 1, 512>}, {transform_indices = @transform_3, window_bounds = array<i64: 8, 512>}]} {
    %c0 = arith.constant 0 : index
    %c0_0 = arith.constant 0 : index
    %0 = vector.load %arg1[%c0, %c0_0] : memref<8x64xf32, #tpu.memory_space<vmem>>, vector<8x64xf32>
    %c0_1 = arith.constant 0 : index
    %c0_2 = arith.constant 0 : index
    %1 = vector.load %arg2[%c0_1, %c0_2] : memref<64x512xf32, #tpu.memory_space<vmem>>, vector<64x512xf32>
    %cst = arith.constant dense<0.000000e+00> : vector<8x512xf32>
    %2 = tpu.matmul %0, %1, %cst {dimension_numbers = #tpu.dot_dimension_numbers<[1], [0], [0], [1], [0, 0, 1, 1], [], []>} : vector<8x64xf32>, vector<64x512xf32>, vector<8x512xf32> -> vector<8x512xf32>
    %c0_3 = arith.constant 0 : index
    %c0_4 = arith.constant 0 : index
    %3 = vector.load %arg3[%c0_3, %c0_4] : memref<1x512xf32, #tpu.memory_space<vmem>>, vector<1x512xf32>
    %4 = vector.broadcast %3 : vector<1x512xf32> to vector<8x512xf32>
    %5 = arith.addf %2, %4 : vector<8x512xf32>
    %cst_5 = arith.constant 0.00999999977 : f32
    %6 = vector.broadcast %cst_5 : f32 to vector<8x512xf32>
    %7 = arith.mulf %6, %5 : vector<8x512xf32>
    %8 = arith.maximumf %5, %7 : vector<8x512xf32>
    %c0_6 = arith.constant 0 : index
    %c0_7 = arith.constant 0 : index
    %9 = vector.load %arg4[%c0_6, %c0_7] : memref<8x512xf32, #tpu.memory_space<vmem>>, vector<8x512xf32>
    tpu.vector_store %arg4[%c0_6, %c0_7], %8 {strides = array<i32>} : memref<8x512xf32, #tpu.memory_space<vmem>>, vector<8x512xf32>,
    return
  }
  func.func @transform_0(%arg0: i32) -> (i32, i32) {
    %c0_i32 = arith.constant 0 : i32
    %c0_i32_0 = arith.constant 0 : i32
    return %arg0, %c0_i32 : i32, i32
  }
  func.func @transform_1(%arg0: i32) -> (i32, i32) {
    %c0_i32 = arith.constant 0 : i32
    %c0_i32_0 = arith.constant 0 : i32
    %c0_i32_1 = arith.constant 0 : i32
    return %c0_i32, %c0_i32_0 : i32, i32
  }
  func.func @transform_2(%arg0: i32) -> (i32, i32) {
    %c0_i32 = arith.constant 0 : i32
    %c0_i32_0 = arith.constant 0 : i32
    %c0_i32_1 = arith.constant 0 : i32
    return %c0_i32, %c0_i32_0 : i32, i32
  }
  func.func @transform_3(%arg0: i32) -> (i32, i32) {
    %c0_i32 = arith.constant 0 : i32
    %c0_i32_0 = arith.constant 0 : i32
    return %arg0, %c0_i32 : i32, i32
  }
}

</mosaic_0001>

<bundles_post_ra>
// kernel: tpu_custom_call.1
= control target key start
LH: loop header
LB: loop body
LE: loop exit
PB: predicated region body
PF: predicated region fallthrough
CT: control target
= control target key end

     0   :  { %8 = vsyncpa [#allocation3], 0  ;;  %s969_s0 = inlined_call_operand.hbm [shape: f32[32,64], index: 0, kind: input, shape index: {}]   ;;  %s970_s1 = inlined_call_operand.hbm [shape: f32[64,512], index: 1, kind: input, shape index: {}]   ;;  %s971_s2 = inlined_call_operand.vmem [shape: f32[1,512], index: 2, kind: input, shape index: {}]   ;;  %s972_s3 = inlined_call_operand.hbm [shape: f32[32,512], index: 3, kind: output, shape index: {}]  }
   0x1   :  { %10 = vsyncpa [#allocation3 + $0x1], 0 }
   0x2   :  { %11 = vsyncpa [#allocation6], 0 }
   0x3   :  { %12 = vsyncpa [#allocation4], 0 }
   0x4   :  { %14 = vsyncpa [#allocation4 + $0x1], 0  ;;  %s775_s12 = smov 0   ;;  %s777_s13 = smov 0  }
   0x5   :  { %s779_s14 = smov 0   ;;  %s781_s15 = smov 0  }
   0x6 LB: > { %s796_s16 = sadd.s32 4294967295, %s747_s15   ;;  %s509_s17 = sadd.s32 4294967294, %s747_s15   ;;  %s747_s15 = sphi %s781_s15, %s991_s15   ;;  %s743_s14 = sphi %s779_s14, %s990_s14   ;;  %s739_s13 = sphi %s777_s13, %s989_s13   ;;  %s735_s12 = sphi %s775_s12, %s988_s12  }
   0x7   : > { %p40_p0 = scmp.ne.s32.totalorder %s739_s13, %s735_s12  ;;  %p973_p1 = scmp.eq.s32.totalorder %s796_s16, 0 }
   0x8   : > { %p112_p3 = scmp.eq.s32.totalorder %s509_s17, 3  ;;  %p510_p5 = scmp.ge.s32.totalorder %s747_s15, 1 }
   0x9   : > { %p805_p4 = por %p973_p1, %p40_p0  ;;  %p119_p7 = scmp.lt.s32.totalorder %s747_s15, 5 }
   0xa   : > { %p810_p6 = por %p112_p3, %p40_p0  ;;  %s749_s21 = smov [#allocation5]  }
   0xb   : > { %s976_s18 = scalar_select %p805_p4, 1, 0 }
   0xc   : > { %s977_s19 = scalar_select %p810_p6, 1, 0 }
   0xd   : > { %p815_p8 = pnand %p510_p5, %p119_p7  ;;  %s131_s22 = sshll.u32 %s749_s21, 4  ;;  %s132_s22 = int_to_ptr.vmem [resolvable:$true] %s131_s22 }
   0xe   : > { %s828_s24 = sadd.s32 1, %s747_s15   ;;  %s27_s25 = sadd.s32 1, %s743_s14 }
   0xf   : > { %s978_s20 = scalar_select %p815_p8, 1, 0 }
  0x10   : > { %p567_p9 = pneg %p815_p8  ;;  %s24_s26 = ssub.s32 %s747_s15, %s828_s24 }
  0x11   : > { %s619_s29 = scalar_lea.hbm %s970_s1, 4096 }
  0x12   : > { %p823_p10 = pnand %p567_p9, %p973_p1  ;;  %p620_p11 = scmp.ne.s32.totalorder %s970_s1, %s619_s29 }
  0x13   : > { %p626_p3 = scmp.lt.u32.totalorder %s619_s29, %s970_s1 }
  0x14   : > { %p621_p12 = pneg %p823_p10 }
  0x16   : > { %p622_p13 = pnand %p621_p12, %p620_p11 }
  0x18   : > { %p623_p0 = pneg %p622_p13 }
  0x1a   : > { %p628_p5 = pnand %p626_p3, %p623_p0 }
  0x1c   : > { %631 = shalt.err (!%p628_p5)
}
  0x1d   : > { %s632_s7 = scalar_lea.vmem %s132_s22, 4096  ;;  %p640_p2 = scmp.lt.s32.totalorder %s132_s22, %s132_s22 }
  0x1e   : > { %p633_p7 = scmp.ne.s32.totalorder %s132_s22, %s632_s7  ;;  %p641_p6 = scmp.lt.s32.totalorder %s632_s7, %s632_s7 }
  0x20   : > { %p635_p9 = pnand %p633_p7, %p621_p12  ;;  %p642_p4 = por %p641_p6, %p640_p2 }
  0x22   : > { %p636_p1 = pneg %p635_p9 }
  0x24   : > { %p643_p8 = pnand %p642_p4, %p636_p1 }
  0x26   : > { %646 = shalt.err (!%p643_p8)
}
  0x27   : > { %s750_s8 = smov 512   ;;  %s751_s9 = smov 32  }
  0x28   : > { %570 = dma.hbm_to_vmem [thread:$0]  (!%p823_p10), %s970_s1, 4096, %s132_s22, [#allocation6], %s750_s8, %s750_s8, %s751_s9  }
  0x29   : > { %p25_p11 = scmp.eq.s32.totalorder %s24_s26, 0  ;;  %p34_p2 = scmp.ne.s32.totalorder %s743_s14, %s739_s13 }
  0x2a   : > { %p35_p1 = scmp.eq.s32.totalorder %s747_s15, 0  ;;  %p580_p4 = scmp.lt.s32.totalorder %s747_s15, 4 }
  0x2b   : > { %s854_s17 = scalar_select %p25_p11, %s743_s14, %s27_s25  }
  0x2c   : > { %p36_p6 = por %p35_p1, %p34_p2  ;;  %p980_p8 = scmp.eq.s32.totalorder %s796_s16, 3 }
  0x2d   : > { %s148_s27 = sand.u32 1, %s743_s14   ;;  %s514_s28 = sshll.u32 %s747_s15, 7 }
  0x2e   : > { %p858_p12 = por %p980_p8, %p34_p2  ;;  %s513_s29 = sshll.u32 %s148_s27, 3 }
  0x2f   : > { %s867_s4 = scalar_lea.hbm %s969_s0, %s514_s28  ;;  %s152_s22 = scalar_lea.vmem [#allocation2], %s513_s29 }
  0x30   : > { %s159_s25 = sshll.u32 %s152_s22, 4  ;;  %p869_p10 = pnand %p580_p4, %p36_p6  ;;  %s873_s25 = int_to_ptr.vmem [resolvable:$true] %s159_s25 }
  0x31   : > { %s149_s5 = scalar_lea.sflag [#allocation3], %s148_s27  ;;  %s647_s6 = scalar_lea.hbm %s867_s4, 128 }
  0x32   : > { %p648_p13 = scmp.ne.s32.totalorder %s867_s4, %s647_s6  ;;  %p649_p0 = pneg %p869_p10 }
  0x33   : > { %s652_s9 = scalar_lea.hbm %s969_s0, 512  ;;  %p653_p7 = scmp.lt.u32.totalorder %s867_s4, %s969_s0 }
  0x34   : > { %p650_p3 = pnand %p649_p0, %p648_p13  ;;  %p654_p9 = scmp.lt.u32.totalorder %s652_s9, %s647_s6 }
  0x35   : > { %p656_p2 = scmp.lt.u32.totalorder %s647_s6, %s867_s4 }
  0x36   : > { %p651_p5 = pneg %p650_p3  ;;  %p655_p11 = por %p654_p9, %p653_p7 }
  0x38   : > { %p657_p1 = por %p656_p2, %p655_p11 }
  0x3a   : > { %p658_p4 = pnand %p657_p1, %p651_p5 }
  0x3c   : > { %661 = shalt.err (!%p658_p4)
}
  0x3d   : > { %s662_s27 = scalar_lea.vmem %s873_s25, 128  ;;  %s752_s28 = smov [#allocation2]  }
  0x3e   : > { %p663_p6 = scmp.ne.s32.totalorder %s873_s25, %s662_s27  ;;  %s667_s29 = sshll.u32 %s752_s28, 4  ;;  %s668_s29 = int_to_ptr.vmem [resolvable:$false] %s667_s29 }
  0x3f   : > { %s669_s23 = scalar_lea.vmem %s668_s29, 256  ;;  %p670_p3 = scmp.lt.s32.totalorder %s873_s25, %s668_s29 }
  0x40   : > { %p665_p8 = pnand %p663_p6, %p649_p0  ;;  %p671_p7 = scmp.lt.s32.totalorder %s669_s23, %s662_s27 }
  0x42   : > { %p666_p13 = pneg %p665_p8  ;;  %p672_p9 = por %p671_p7, %p670_p3 }
  0x44   : > { %p673_p11 = pnand %p672_p9, %p666_p13 }
  0x46   : > { %676 = shalt.err (!%p673_p11)
}
  0x47   : > { %574 = dma.hbm_to_vmem [thread:$0]  (!%p869_p10), %s867_s4, 128, %s873_s25, %s149_s5  }
  0x48   : > { %p983_p5 = scmp.ne.s32.totalorder %s978_s20, 0 }
  0x49   : > { %s903_s30 = sand.u32 (!%p983_p5), 1, %s739_s13   ;;  %p984_p0 = scmp.ne.s32.totalorder (!%p983_p5), %s976_s18, 0 }
  0x4a   : > { %168 = sbr.rel (%p983_p5) target bundleno = 339 (0x153), region = 32  ;;  %s516_s22 = sshll.u32 (!%p983_p5), %s903_s30, 3 }
  0x4b   : > { %s171_s6 = scalar_lea.sflag (!%p983_p5), [#allocation3], %s903_s30  ;;  %s907_s7 = scalar_lea.vmem (!%p983_p5), [#allocation2], %s516_s22 }
  0x51   : > { %722 = dma.done.wait (%p984_p0), %s171_s6, 128  }
  0x52   : > { %724 = vsyncadd (%p984_p0), %s171_s6, 4294967168  ;;  %p985_p10 = scmp.eq.s32.totalorder %s796_s16, 0 }
  0x54   : > { %726 = dma.done.wait (%p985_p10), [#allocation6], 4096   ;;  %p986_p2 = pmov %p985_p10 }
  0x55   : > { %v753_v0 = vmov 0.0   ;;  %v203_v1 = vld [vmem:[#allocation5 + $0x8] sm:$0xff]  ;;  %v205_v3 = vld [vmem:[#allocation5 + $0x18] sm:$0xff]  ;;  %v202_v6 = vld [vmem:[#allocation5] sm:$0xff]  ;;  %vm256_vm0 = vcmask 523264   ;;  %v236_v50 = vlaneseq  ;;  %s518_s4 = sshll.u32 %s903_s30, 5 }
  0x56   : > { %728 = vsyncadd (%p986_p2), [#allocation6], 4294963200  ;;  %324 = vmatprep.mubr.f32.mxu0 %v753_v0  ;;  %395 = vmatprep.mubr.f32.mxu1 %v753_v0  ;;  %v207_v2 = vld [vmem:[#allocation5 + $0x28] sm:$0xff]  ;;  %v209_v5 = vld [vmem:[#allocation5 + $0x38] sm:$0xff]  ;;  %s526_s25 = sshll.u32 %s796_s16, 9  ;;  %s200_s26 = scalar_lea.vmem [#allocation7], %s518_s4 }
  0x57   : > { %v527_v4 = vpack.c.bf16 %v207_v2, %v203_v1  ;;  %v206_v7 = vld [vmem:[#allocation5 + $0x20] sm:$0xff]  ;;  %v543_v8 = vpack.c.bf16 %v209_v5, %v205_v3  ;;  %v204_v10 = vld [vmem:[#allocation5 + $0x10] sm:$0xff]  ;;  %v211_v12 = vld [vmem:[#allocation5 + $0x48] sm:$0xff]  ;;  %v237_v51 = vshrl.u32 %v236_v50, 7  ;;  %s429_s5 = sshll.u32 %s200_s26, 4  ;;  %s926_s10 = scalar_lea.hbm %s972_s3, %s526_s25  ;;  %s928_s5 = int_to_ptr.vmem [resolvable:$true] %s429_s5 }
  0x58   : > { %v529_v9 = vpack.c.bf16 %v206_v7, %v202_v6  ;;  %v208_v11 = vld [vmem:[#allocation5 + $0x30] sm:$0xff]  ;;  %v215_v14 = vld [vmem:[#allocation5 + $0x68] sm:$0xff]  ;;  %v213_v15 = vld [vmem:[#allocation5 + $0x58] sm:$0xff]  ;;  %s415_s16 = scalar_lea.sflag [#allocation4], %s903_s30  ;;  %s677_s11 = scalar_lea.vmem %s928_s5, 512 }
  0x59   : > { %528 = vmatprep.subr.bf16.mxu0 %v527_v4  ;;  %v545_v13 = vpack.c.bf16 %v208_v11, %v204_v10  ;;  %v217_v16 = vld [vmem:[#allocation5 + $0x78] sm:$0xff]  ;;  %544 = vmatprep.subr.bf16.mxu1 %v543_v8  ;;  %v531_v17 = vpack.c.bf16 %v215_v14, %v211_v12  ;;  %v210_v19 = vld [vmem:[#allocation5 + $0x40] sm:$0xff]  ;;  %v212_v21 = vld [vmem:[#allocation5 + $0x50] sm:$0xff]  ;;  %v238_v52 = vsub.s32 0, %v237_v51  ;;  %v246_v54 = vsub.s32 2, %v237_v51  ;;  %p678_p1 = scmp.ne.s32.totalorder %s928_s5, %s677_s11  ;;  %s754_s27 = smov [#allocation7]  }
  0x5a   : > { %530 = vmatpush1.bf16.msra.mxu0 %v529_v9  ;;  %v547_v18 = vpack.c.bf16 %v217_v16, %v213_v15  ;;  %v214_v20 = vld [vmem:[#allocation5 + $0x60] sm:$0xff]  ;;  %v216_v23 = vld [vmem:[#allocation5 + $0x70] sm:$0xff]  ;;  %v219_v24 = vld [vmem:[#allocation5 + $0x88] sm:$0xff]  ;;  %v242_v55 = vsub.s32 1, %v237_v51  ;;  %v250_v56 = vsub.s32 3, %v237_v51  ;;  %s681_s28 = sshll.u32 %s754_s27, 4  ;;  %s682_s28 = int_to_ptr.vmem [resolvable:$false] %s681_s28 }
  0x5b   : > { %546 = vmatpush1.bf16.msra.mxu1 %v545_v13  ;;  %v533_v22 = vpack.c.bf16 %v214_v20, %v210_v19  ;;  %v223_v25 = vld [vmem:[#allocation5 + $0xa8] sm:$0xff]  ;;  %532 = vmatprep.subr.bf16.mxu0 %v531_v17  ;;  %v549_v26 = vpack.c.bf16 %v216_v23, %v212_v21  ;;  %v221_v28 = vld [vmem:[#allocation5 + $0x98] sm:$0xff]  ;;  %v218_v30 = vld [vmem:[#allocation5 + $0x80] sm:$0xff]  ;;  %p679_p4 = pnand %p678_p1, %p858_p12  ;;  %s683_s29 = scalar_lea.vmem %s682_s28, 1024 }
  0x5c   : > { %548 = vmatprep.subr.bf16.mxu1 %v547_v18  ;;  %v535_v27 = vpack.c.bf16 %v223_v25, %v219_v24  ;;  %v225_v29 = vld [vmem:[#allocation5 + $0xb8] sm:$0xff]  ;;  %v222_v32 = vld [vmem:[#allocation5 + $0xa0] sm:$0xff]  ;;  %v220_v33 = vld [vmem:[#allocation5 + $0x90] sm:$0xff]  ;;  %p684_p8 = scmp.lt.s32.totalorder %s928_s5, %s682_s28  ;;  %p685_p13 = scmp.lt.s32.totalorder %s683_s29, %s677_s11 }
  0x5d   : > { %v551_v31 = vpack.c.bf16 %v225_v29, %v221_v28  ;;  %v224_v34 = vld [vmem:[#allocation5 + $0xb0] sm:$0xff]  ;;  %v537_v35 = vpack.c.bf16 %v222_v32, %v218_v30  ;;  %v227_v36 = vld [vmem:[#allocation5 + $0xc8] sm:$0xff]  ;;  %v229_v38 = vld [vmem:[#allocation5 + $0xd8] sm:$0xff]  ;;  %p680_p6 = pneg %p679_p4 }
  0x5e   : > { %534 = vmatpush1.bf16.msra.mxu0 %v533_v22  ;;  %v231_v37 = vld [vmem:[#allocation5 + $0xe8] sm:$0xff]  ;;  %v553_v39 = vpack.c.bf16 %v224_v34, %v220_v33  ;;  %v233_v41 = vld [vmem:[#allocation5 + $0xf8] sm:$0xff]  ;;  %v226_v42 = vld [vmem:[#allocation5 + $0xc0] sm:$0xff]  ;;  %p686_p3 = por %p685_p13, %p684_p8 }
  0x5f   : > { %550 = vmatpush1.bf16.msra.mxu1 %v549_v26  ;;  %536 = vmatprep.subr.bf16.mxu0 %v535_v27  ;;  %v539_v40 = vpack.c.bf16 %v231_v37, %v227_v36  ;;  %v230_v43 = vld [vmem:[#allocation5 + $0xe0] sm:$0xff]  ;;  %v555_v44 = vpack.c.bf16 %v233_v41, %v229_v38  ;;  %v228_v45 = vld [vmem:[#allocation5 + $0xd0] sm:$0xff] }
  0x60   : > { %552 = vmatprep.subr.bf16.mxu1 %v551_v31  ;;  %v232_v46 = vld [vmem:[#allocation5 + $0xf0] sm:$0xff]  ;;  %v541_v47 = vpack.c.bf16 %v230_v43, %v226_v42  ;;  %p687_p7 = pnand %p686_p3, %p680_p6 }
  0x61   : > { %v557_v48 = vpack.c.bf16 %v232_v46, %v228_v45  ;;  %v201_v49 = vld [vmem:[%s907_s7] sm:$0xff] }
  0x62   : > { %538 = vmatpush1.bf16.msra.mxu0 %v537_v35  ;;  %v234_v53 = vld [vmem:[%s971_s2] sm:$0xf] }
  0x63   : > { %554 = vmatpush1.bf16.msra.mxu1 %v553_v39  ;;  %540 = vmatprep.subr.bf16.mxu0 %v539_v40  ;;  %v239_v57 = vrot.slane %v234_v53, %v238_v52  ;;  %v247_v58 = vrot.slane %v234_v53, %v246_v54  ;;  %v243_v59 = vrot.slane %v234_v53, %v242_v55 }
  0x64   : > { %556 = vmatprep.subr.bf16.mxu1 %v555_v44  ;;  %v251_v60 = vrot.slane %v234_v53, %v250_v56 }
  0x66   : > { %542 = vmatpush1.bf16.msra.mxu0 %v541_v47 }
  0x67   : > { %558 = vmatpush1.bf16.msra.mxu1 %v557_v48 }
  0x69   : > { %519 = vmatmul.mubr.msk.f32.vlgmr.msra.gmra.mrb[0].mxu0 %vm256_vm0, %v201_v49 }
  0x6a   : > { %520 = vmatmul.mubr.msk.f32.vlgmr.msra.gmra.mrb[0].mxu1 %vm256_vm0, %v201_v49 }
 0x13c   : > { %v326_v61 = vpop.f32.mrb[0].mxu0 }
 0x13d   : > { %v327_v62 = vadd.f32 %v326_v61, %v239_v57  ;;  %v397_v63 = vpop.f32.mrb[0].mxu1  ;;  %v328_v0 = vpop.f32.mrb[1].mxu0 }
 0x13e   : > { %v398_v1 = vadd.f32 %v397_v63, %v247_v58  ;;  %v329_v2 = vadd.f32 %v328_v0, %v243_v59  ;;  %v399_v3 = vpop.f32.mrb[1].mxu1 }
 0x13f   : > { %v402_v4 = vmul.f32 0.01, %v327_v62  ;;  %v400_v5 = vadd.f32 %v399_v3, %v251_v60 }
 0x140   : > { %v404_v6 = vmul.f32 0.01, %v398_v1  ;;  %v403_v7 = vmul.f32 0.01, %v329_v2 }
 0x141   : > { %v406_v8 = vmax.f32 %v327_v62, %v402_v4  ;;  %v405_v9 = vmul.f32 0.01, %v400_v5 }
 0x142   : > { %v408_v10 = vmax.f32 %v398_v1, %v404_v6  ;;  %v407_v11 = vmax.f32 %v329_v2, %v403_v7 }
 0x143   : > { %410 = vst [vmem:[%s200_s26] sm:$0xff] %v406_v8  ;;  %v409_v12 = vmax.f32 %v400_v5, %v405_v9 }
 0x144   : > { %412 = vst [vmem:[%s200_s26 + $0x10] sm:$0xff] %v408_v10  ;;  %411 = vst [vmem:[%s200_s26 + $0x8] sm:$0xff] %v407_v11 }
 0x145   : > { %413 = vst [vmem:[%s200_s26 + $0x18] sm:$0xff] %v409_v12 }
 0x146   : > { %690 = shalt.err (!%p687_p7)
}
 0x147   : > { %s691_s23 = scalar_lea.hbm %s926_s10, 512  ;;  %s695_s6 = scalar_lea.hbm %s972_s3, 2048 }
 0x148   : > { %p692_p9 = scmp.ne.s32.totalorder %s926_s10, %s691_s23  ;;  %p696_p0 = scmp.lt.u32.totalorder %s926_s10, %s972_s3 }
 0x149   : > { %p697_p10 = scmp.lt.u32.totalorder %s695_s6, %s691_s23  ;;  %p699_p1 = scmp.lt.u32.totalorder %s691_s23, %s926_s10 }
 0x14a   : > { %p693_p11 = pnand %p692_p9, %p858_p12 }
 0x14b   : > { %p698_p2 = por %p697_p10, %p696_p0 }
 0x14c   : > { %p694_p5 = pneg %p693_p11 }
 0x14d   : > { %p700_p4 = por %p699_p1, %p698_p2 }
 0x14f   : > { %p701_p6 = pnand %p700_p4, %p694_p5 }
 0x151   : > { %704 = shalt.err (!%p701_p6)
}
 0x152   : > { %565 = dma.vmem_to_hbm [thread:$0]  (%p858_p12), %s928_s5, 512, %s926_s10, %s415_s16  }
 0x153 PF: > { %p582_p8 = scmp.ge.s32.totalorder %s747_s15, 2  ;;  %s441_s20 = sand.u32 1, %s735_s12  }
 0x154   : > { %p987_p13 = scmp.ne.s32.totalorder %s977_s19, 0  ;;  %s442_s4 = scalar_lea.sflag [#allocation4], %s441_s20 }
 0x156   : > { %p576_p3 = pnand %p582_p8, %p987_p13 }
 0x158   : > { %730 = dma.done.wait (!%p576_p3), %s442_s4, 512  }
 0x159   : > { %732 = vsyncadd (!%p576_p3), %s442_s4, 4294966784  ;;  %p17_p7 = scmp.ge.s32.totalorder %s828_s24, 6   ;;  %s988_s12 = smov %s739_s13 }
 0x15a   : > { %s989_s13 = smov %s743_s14  ;;  %s990_s14 = smov %s854_s17 }
 0x15b   : > { %s991_s15 = smov %s828_s24  ;;  %19 = sbr.rel (!%p17_p7) target bundleno = 6 (0x6), region = 81 }
 0x162   :  { %447 = vsyncpa [#allocation3], 1 }
 0x163   :  { %449 = vsyncpa [#allocation3 + $0x1], 1 }
 0x164   :  { %450 = vsyncpa [#allocation6], 1 }
 0x165   :  { %451 = vsyncpa [#allocation4], 1 }
 0x166   :  { %453 = vsyncpa [#allocation4 + $0x1], 1 }

</bundles_post_ra>
